<compile_context>
chip_gen: v6e
topology: v6e:2x2x1
jax: 0.10.0
libtpu: 0.0.40
codegen_flags: <defaults>
</compile_context>

<pallas_src>
import jax
import jax.numpy as jnp
from jax.experimental import pallas as pl
from jax.experimental.pallas import tpu as pltpu


def _round_up(v, m):
    return ((v + m - 1) // m) * m


def _vmem_budget_bytes():
    # Generation-aware VMEM budget for the pipelined working set
    # (v7x: 64 MiB physical VMEM vs 128 MiB on v5e/v6e). Conservative fallback.
    try:
        cap = pltpu.get_tpu_info().vmem_capacity_bytes
        return max(4 << 20, min(cap // 3, 24 << 20))
    except Exception:
        return 16 << 20


def _openmax_kernel(x_ref, mavT_ref, const_ref, out_ref):
    # x_ref:     (TN, D)      tile of features (f32 or bf16)
    # mavT_ref:  (D, C_pad)   class mean-activation vectors, pre-transposed (padded cols = 0)
    # const_ref: (8, C_pad)   packed per-class constants:
    #              row 0: ||mav||^2          (padded cols 0)
    #              row 1: Weibull shape      (padded cols 1)
    #              row 2: 1 / Weibull scale  (padded cols 0 -> zero contribution)
    #              row 3: one-hot at col C   (unknown-score column)
    # out_ref:   (TN, C_pad)  fused [openmax | unknown | 0-padding] slab
    m2 = const_ref[0:1, :]
    shp = const_ref[1:2, :]
    iscl = const_ref[2:3, :]
    unk_onehot = const_ref[3:4, :]

    x = x_ref[...]
    xf = x.astype(jnp.float32)

    # Pairwise euclidean distances via MXU matmul:
    #   ||x||^2 + ||m||^2 - 2 x.m^T     (||m||^2 hoisted to the wrapper)
    x2 = jnp.sum(xf * xf, axis=-1, keepdims=True)                        # (TN, 1)
    xm = jnp.dot(x, mavT_ref[...], preferred_element_type=jnp.float32)   # (TN, C_pad)
    d = jnp.sqrt(jnp.maximum(x2 + m2 - 2.0 * xm, 0.0))                   # (TN, C_pad)

    # (d / scale)^shape == exp(shape * log(d * inv_scale)).
    # d == 0 or padded column (inv_scale == 0): log -> -inf -> t == 0 (shape > 0).
    t = jnp.exp(shp * jnp.log(d * iscl))                                 # (TN, C_pad)

    # Weibull CDF 1 - exp(-t), with a short series for tiny t so small scores
    # keep good relative accuracy (no reliance on an expm1 lowering).
    cdf = jnp.where(
        t < 0.04,
        t * (1.0 - 0.5 * t + (1.0 / 6.0) * (t * t)),
        1.0 - jnp.exp(-t),
    )
    openmax = jnp.exp(-d) * cdf                                          # (TN, C_pad)

    # Fuse the unknown score (1 - row sum) into column C of the same slab
    # (padded columns are exactly 0, so the full-row sum is correct).
    unknown = 1.0 - jnp.sum(openmax, axis=-1, keepdims=True)             # (TN, 1)
    out_ref[...] = (openmax + unknown * unk_onehot).astype(out_ref.dtype)


def openmax_forward(x, mavs, wb_shape, wb_scale, *, tile_n=None):
    """x: [N, D], mavs: [C, D], wb_shape/wb_scale: [C] -> [N, C+1] f32."""
    N, D = x.shape
    C, _ = mavs.shape

    # Output slab: known classes + unknown column, lane-padded to a multiple of 128.
    C_pad = _round_up(C + 1, 128)

    # MXU operands keep the input dtype when it's already MXU-friendly
    # (bf16 halves streamed x bytes); element-wise math runs in f32 in-kernel.
    mm_dtype = x.dtype if x.dtype in (jnp.bfloat16, jnp.float32) else jnp.float32
    x_mm = x.astype(mm_dtype)
    xb = jnp.dtype(mm_dtype).itemsize

    # --- VMEM-budgeted row tile -------------------------------------------
    inv_bytes = 2 * D * C_pad * xb + 2 * 8 * C_pad * 4        # mavT + const slab (x2 buffers)
    per_row = 2 * (D * xb + C_pad * 4)                        # x tile + out tile, double-buffered
    if tile_n is None:
        budget = _vmem_budget_bytes()
        tn = max(8, (budget - inv_bytes) // per_row)
        tn = min(1024, int(tn)) // 8 * 8
        tn = max(8, tn)
    else:
        tn = _round_up(max(tile_n, 8), 8)

    n8 = _round_up(N, 8)
    tn = min(tn, n8)
    if n8 >= 16:
        # Keep >= 2 grid steps so the 'parallel' row axis can shard across the
        # two TensorCores on v7x (no-op on single-TC v5e/v6e).
        tn = min(tn, _round_up((n8 + 1) // 2, 8))
    N_pad = _round_up(N, tn)

    est_vmem = inv_bytes + tn * per_row
    vmem_limit = int(min(48 << 20, max(8 << 20, est_vmem * 3 // 2 + (1 << 20))))

    # --- hoisted, padded operands -------------------------------------------
    if N_pad != N:
        x_mm = jnp.pad(x_mm, ((0, N_pad - N), (0, 0)))

    mavs_f = mavs.astype(jnp.float32)
    mavT = jnp.zeros((D, C_pad), mm_dtype).at[:, :C].set(mavs_f.T.astype(mm_dtype))

    const = jnp.zeros((8, C_pad), jnp.float32)
    const = const.at[0, :C].set(jnp.sum(mavs_f * mavs_f, axis=-1))      # ||mav||^2
    const = const.at[1, :].set(1.0)                                     # shape = 1 in padded cols
    const = const.at[1, :C].set(wb_shape.astype(jnp.float32))           # Weibull shape
    const = const.at[2, :C].set(1.0 / wb_scale.astype(jnp.float32))     # 1/scale (padded cols 0)
    const = const.at[3, C].set(1.0)                                     # unknown one-hot at col C

    grid = (N_pad // tn,)
    om_pad = pl.pallas_call(
        _openmax_kernel,
        out_shape=jax.ShapeDtypeStruct((N_pad, C_pad), jnp.float32),
        grid_spec=pltpu.PrefetchScalarGridSpec(
            num_scalar_prefetch=0,
            grid=grid,
            in_specs=[
                pl.BlockSpec((tn, D), lambda i: (i, 0)),       # x tile (streamed)
                pl.BlockSpec((D, C_pad), lambda i: (0, 0)),    # mavs^T (grid-invariant)
                pl.BlockSpec((8, C_pad), lambda i: (0, 0)),    # packed per-class constants
            ],
            out_specs=pl.BlockSpec((tn, C_pad), lambda i: (i, 0)),  # fused lane-dense slab
        ),
        compiler_params=pltpu.CompilerParams(
            dimension_semantics=("parallel",),
            vmem_limit_bytes=vmem_limit,
        ),
    )(x_mm, mavT, const)

    # First C+1 lanes of the slab are exactly the module's [N, C+1] output; the
    # slice is the only post-kernel op (no concatenate, no second output).
    return om_pad[:N, :C + 1]


def _reference(x, mavs, wb_shape, wb_scale):
    d = jnp.sqrt(
        jnp.maximum(
            jnp.sum(x * x, -1, keepdims=True)
            + jnp.sum(mavs * mavs, -1)[None, :]
            - 2.0 * x @ mavs.T,
            0.0,
        )
    )
    cdf = 1.0 - jnp.exp(-jnp.power(d / wb_scale[None, :], wb_shape[None, :]))
    om = jnp.exp(-d) * cdf
    unk = 1.0 - jnp.sum(om, -1, keepdims=True)
    return jnp.concatenate([om, unk], axis=-1)


if __name__ == "__main__":
    key = jax.random.PRNGKey(0)
    k1, k2, k3, k4 = jax.random.split(key, 4)

    N, D, C = 16, 32, 4  # batch of features, feature dim, number of known classes

    x = jax.random.normal(k1, (N, D), dtype=jnp.float32)
    mavs = jax.random.normal(k2, (C, D), dtype=jnp.float32)
    # Deterministic synthetic Weibull params (would come from weibull_min.fit; floc=0)
    # TODO(synk): scipy's weibull_min.fit (MLE fitting) has no Pallas equivalent;
    # shape/scale are taken as precomputed per-class inputs, matching forward().
    wb_shape = 1.0 + 2.0 * jax.random.uniform(k3, (C,), dtype=jnp.float32)   # shape in [1, 3)
    wb_scale = 1.0 + 4.0 * jax.random.uniform(k4, (C,), dtype=jnp.float32)   # scale in [1, 5)

    out = openmax_forward(x, mavs, wb_shape, wb_scale)
    out = jax.block_until_ready(out)

    ref = _reference(x, mavs, wb_shape, wb_scale)
    assert out.shape == (N, C + 1)
    assert jnp.allclose(out, ref, atol=1e-5, rtol=1e-4), "mismatch vs reference"

    print("KERNEL_OK")
</pallas_src>

<mosaic_0001>
module attributes {stable_mosaic.version = 11 : i64} {
  func.func @_openmax_kernel(%arg0: i32, %arg1: memref<8x32xf32, #tpu.memory_space<vmem>>, %arg2: memref<32x128xf32, #tpu.memory_space<vmem>>, %arg3: memref<8x128xf32, #tpu.memory_space<vmem>>, %arg4: memref<8x128xf32, #tpu.memory_space<vmem>>) attributes {dimension_semantics = [#tpu.dimension_semantics<parallel>], iteration_bounds = array<i64: 2>, scalar_prefetch = 0 : i64, scratch_operands = 0 : i64, tpu.core_type = #tpu.core_type<tc>, window_params = [{transform_indices = @transform_0, window_bounds = array<i64: 8, 32>}, {pipeline_mode = #tpu.pipeline_mode<synchronous>, transform_indices = @transform_1, window_bounds = array<i64: 32, 128>}, {pipeline_mode = #tpu.pipeline_mode<synchronous>, transform_indices = @transform_2, window_bounds = array<i64: 8, 128>}, {transform_indices = @transform_3, window_bounds = array<i64: 8, 128>}]} {
    %c0 = arith.constant 0 : index
    %c0_0 = arith.constant 0 : index
    %0 = vector.load %arg3[%c0, %c0_0] : memref<8x128xf32, #tpu.memory_space<vmem>>, vector<1x128xf32>
    %c1 = arith.constant 1 : index
    %c0_1 = arith.constant 0 : index
    %1 = vector.load %arg3[%c1, %c0_1] : memref<8x128xf32, #tpu.memory_space<vmem>>, vector<1x128xf32>
    %c2 = arith.constant 2 : index
    %c0_2 = arith.constant 0 : index
    %2 = vector.load %arg3[%c2, %c0_2] : memref<8x128xf32, #tpu.memory_space<vmem>>, vector<1x128xf32>
    %c3 = arith.constant 3 : index
    %c0_3 = arith.constant 0 : index
    %3 = vector.load %arg3[%c3, %c0_3] : memref<8x128xf32, #tpu.memory_space<vmem>>, vector<1x128xf32>
    %c0_4 = arith.constant 0 : index
    %c0_5 = arith.constant 0 : index
    %4 = vector.load %arg1[%c0_4, %c0_5] : memref<8x32xf32, #tpu.memory_space<vmem>>, vector<8x32xf32>
    %5 = arith.mulf %4, %4 : vector<8x32xf32>
    %cst = arith.constant dense<0.000000e+00> : vector<8xf32>
    %6 = vector.multi_reduction <add>, %5, %cst [1] : vector<8x32xf32> to vector<8xf32>
    %7 = vector.shape_cast %6 : vector<8xf32> to vector<8x1xf32>
    %c0_6 = arith.constant 0 : index
    %c0_7 = arith.constant 0 : index
    %8 = vector.load %arg2[%c0_6, %c0_7] : memref<32x128xf32, #tpu.memory_space<vmem>>, vector<32x128xf32>
    %cst_8 = arith.constant dense<0.000000e+00> : vector<8x128xf32>
    %9 = tpu.matmul %4, %8, %cst_8 {dimension_numbers = #tpu.dot_dimension_numbers<[1], [0], [0], [1], [0, 0, 1, 1], [], []>} : vector<8x32xf32>, vector<32x128xf32>, vector<8x128xf32> -> vector<8x128xf32>
    %10 = vector.broadcast %7 : vector<8x1xf32> to vector<8x128xf32>
    %11 = vector.broadcast %0 : vector<1x128xf32> to vector<8x128xf32>
    %12 = arith.addf %10, %11 : vector<8x128xf32>
    %cst_9 = arith.constant 2.000000e+00 : f32
    %13 = vector.broadcast %cst_9 : f32 to vector<8x128xf32>
    %14 = arith.mulf %13, %9 : vector<8x128xf32>
    %15 = arith.subf %12, %14 : vector<8x128xf32>
    %cst_10 = arith.constant 0.000000e+00 : f32
    %16 = vector.broadcast %cst_10 : f32 to vector<8x128xf32>
    %17 = arith.maximumf %15, %16 : vector<8x128xf32>
    %18 = math.sqrt %17 : vector<8x128xf32>
    %19 = vector.broadcast %2 : vector<1x128xf32> to vector<8x128xf32>
    %20 = arith.mulf %18, %19 : vector<8x128xf32>
    %21 = math.log %20 : vector<8x128xf32>
    %22 = vector.broadcast %1 : vector<1x128xf32> to vector<8x128xf32>
    %23 = arith.mulf %22, %21 : vector<8x128xf32>
    %24 = math.exp %23 : vector<8x128xf32>
    %cst_11 = arith.constant 4.000000e-02 : f32
    %25 = vector.broadcast %cst_11 : f32 to vector<8x128xf32>
    %26 = arith.cmpf olt, %24, %25 : vector<8x128xf32>
    %cst_12 = arith.constant 5.000000e-01 : f32
    %27 = vector.broadcast %cst_12 : f32 to vector<8x128xf32>
    %28 = arith.mulf %27, %24 : vector<8x128xf32>
    %cst_13 = arith.constant 1.000000e+00 : f32
    %29 = vector.broadcast %cst_13 : f32 to vector<8x128xf32>
    %30 = arith.subf %29, %28 : vector<8x128xf32>
    %31 = arith.mulf %24, %24 : vector<8x128xf32>
    %cst_14 = arith.constant 0.166666672 : f32
    %32 = vector.broadcast %cst_14 : f32 to vector<8x128xf32>
    %33 = arith.mulf %32, %31 : vector<8x128xf32>
    %34 = arith.addf %30, %33 : vector<8x128xf32>
    %35 = arith.mulf %24, %34 : vector<8x128xf32>
    %cst_15 = arith.constant 0.000000e+00 : f32
    %36 = vector.broadcast %cst_15 : f32 to vector<8x128xf32>
    %37 = arith.subf %36, %24 : vector<8x128xf32>
    %38 = math.exp %37 : vector<8x128xf32>
    %cst_16 = arith.constant 1.000000e+00 : f32
    %39 = vector.broadcast %cst_16 : f32 to vector<8x128xf32>
    %40 = arith.subf %39, %38 : vector<8x128xf32>
    %41 = arith.select %26, %35, %40 : vector<8x128xi1>, vector<8x128xf32>
    %cst_17 = arith.constant 0.000000e+00 : f32
    %42 = vector.broadcast %cst_17 : f32 to vector<8x128xf32>
    %43 = arith.subf %42, %18 : vector<8x128xf32>
    %44 = math.exp %43 : vector<8x128xf32>
    %45 = arith.mulf %44, %41 : vector<8x128xf32>
    %cst_18 = arith.constant dense<0.000000e+00> : vector<8xf32>
    %46 = vector.multi_reduction <add>, %45, %cst_18 [1] : vector<8x128xf32> to vector<8xf32>
    %47 = vector.shape_cast %46 : vector<8xf32> to vector<8x1xf32>
    %cst_19 = arith.constant 1.000000e+00 : f32
    %48 = vector.broadcast %cst_19 : f32 to vector<8x1xf32>
    %49 = arith.subf %48, %47 : vector<8x1xf32>
    %50 = vector.broadcast %49 : vector<8x1xf32> to vector<8x128xf32>
    %51 = vector.broadcast %3 : vector<1x128xf32> to vector<8x128xf32>
    %52 = arith.mulf %50, %51 : vector<8x128xf32>
    %53 = arith.addf %45, %52 : vector<8x128xf32>
    %c0_20 = arith.constant 0 : index
    %c0_21 = arith.constant 0 : index
    %54 = vector.load %arg4[%c0_20, %c0_21] : memref<8x128xf32, #tpu.memory_space<vmem>>, vector<8x128xf32>
    tpu.vector_store %arg4[%c0_20, %c0_21], %53 {strides = array<i32>} : memref<8x128xf32, #tpu.memory_space<vmem>>, vector<8x128xf32>,
    return
  }
  func.func @transform_0(%arg0: i32) -> (i32, i32) {
    %c0_i32 = arith.constant 0 : i32
    %c0_i32_0 = arith.constant 0 : i32
    return %arg0, %c0_i32 : i32, i32
  }
  func.func @transform_1(%arg0: i32) -> (i32, i32) {
    %c0_i32 = arith.constant 0 : i32
    %c0_i32_0 = arith.constant 0 : i32
    %c0_i32_1 = arith.constant 0 : i32
    return %c0_i32, %c0_i32_0 : i32, i32
  }
  func.func @transform_2(%arg0: i32) -> (i32, i32) {
    %c0_i32 = arith.constant 0 : i32
    %c0_i32_0 = arith.constant 0 : i32
    %c0_i32_1 = arith.constant 0 : i32
    return %c0_i32, %c0_i32_0 : i32, i32
  }
  func.func @transform_3(%arg0: i32) -> (i32, i32) {
    %c0_i32 = arith.constant 0 : i32
    %c0_i32_0 = arith.constant 0 : i32
    return %arg0, %c0_i32 : i32, i32
  }
}

</mosaic_0001>

<bundles_post_ra>
// kernel: tpu_custom_call.1
= control target key start
LH: loop header
LB: loop body
LE: loop exit
PB: predicated region body
PF: predicated region fallthrough
CT: control target
= control target key end

     0   :  { %8 = vsyncpa [#allocation3], 0  ;;  %s923_s0 = inlined_call_operand.hbm [shape: f32[16,32], index: 0, kind: input, shape index: {}]   ;;  %s924_s1 = inlined_call_operand.hbm [shape: f32[32,128], index: 1, kind: input, shape index: {}]   ;;  %s925_s2 = inlined_call_operand.hbm [shape: f32[8,128], index: 2, kind: input, shape index: {}]   ;;  %s926_s3 = inlined_call_operand.hbm [shape: f32[16,128], index: 3, kind: output, shape index: {}]  }
   0x1   :  { %10 = vsyncpa [#allocation3 + $0x1], 0 }
   0x2   :  { %11 = vsyncpa [#allocation6], 0 }
   0x3   :  { %12 = vsyncpa [#allocation4], 0 }
   0x4   :  { %14 = vsyncpa [#allocation4 + $0x1], 0  ;;  %s754_s12 = smov 0   ;;  %s756_s13 = smov 0  }
   0x5   :  { %s758_s14 = smov 0   ;;  %s760_s15 = smov 0  }
   0x6 LB: > { %s775_s16 = sadd.s32 4294967295, %s724_s15   ;;  %s458_s17 = sadd.s32 4294967294, %s724_s15   ;;  %s724_s15 = sphi %s760_s15, %s948_s15   ;;  %s720_s14 = sphi %s758_s14, %s947_s14   ;;  %s716_s13 = sphi %s756_s13, %s946_s13   ;;  %s712_s12 = sphi %s754_s12, %s945_s12  }
   0x7   : > { %p40_p0 = scmp.ne.s32.totalorder %s716_s13, %s712_s12  ;;  %p927_p1 = scmp.eq.s32.totalorder %s775_s16, 0 }
   0x8   : > { %p112_p3 = scmp.eq.s32.totalorder %s458_s17, 1  ;;  %p459_p5 = scmp.ge.s32.totalorder %s724_s15, 1 }
   0x9   : > { %p784_p4 = por %p927_p1, %p40_p0  ;;  %p119_p7 = scmp.lt.s32.totalorder %s724_s15, 3 }
   0xa   : > { %p789_p6 = por %p112_p3, %p40_p0  ;;  %s726_s21 = smov [#allocation5]  }
   0xb   : > { %s931_s18 = scalar_select %p784_p4, 1, 0 }
   0xc   : > { %s932_s19 = scalar_select %p789_p6, 1, 0 }
   0xd   : > { %p794_p8 = pnand %p459_p5, %p119_p7  ;;  %s131_s22 = sshll.u32 %s726_s21, 4  ;;  %s132_s22 = int_to_ptr.vmem [resolvable:$true] %s131_s22 }
   0xe   : > { %s727_s24 = smov [#allocation7]   ;;  %s587_s26 = scalar_lea.vmem %s132_s22, 512 }
   0xf   : > { %s933_s20 = scalar_select %p794_p8, 1, 0 }
  0x10   : > { %p507_p9 = pneg %p794_p8  ;;  %s145_s25 = sshll.u32 %s727_s24, 4  ;;  %s146_s25 = int_to_ptr.vmem [resolvable:$true] %s145_s25 }
  0x11   : > { %p588_p13 = scmp.ne.s32.totalorder %s132_s22, %s587_s26  ;;  %p595_p5 = scmp.lt.s32.totalorder %s132_s22, %s132_s22 }
  0x12   : > { %p803_p11 = pnand %p507_p9, %p927_p1  ;;  %p596_p7 = scmp.lt.s32.totalorder %s587_s26, %s587_s26 }
  0x14   : > { %p578_p12 = pneg %p803_p11  ;;  %p597_p10 = por %p596_p7, %p595_p5 }
  0x16   : > { %p590_p0 = pnand %p588_p13, %p578_p12 }
  0x18   : > { %p591_p3 = pneg %p590_p0 }
  0x1a   : > { %p598_p9 = pnand %p597_p10, %p591_p3 }
  0x1c   : > { %601 = shalt.err (!%p598_p9)
}
  0x1d   : > { %s728_s27 = smov 128   ;;  %s729_s28 = smov 8  }
  0x1e   : > { %510 = dma.hbm_to_vmem [thread:$0]  (!%p803_p11), %s924_s1, 512, %s132_s22, [#allocation6], %s728_s27, %s728_s27, %s729_s28  }
  0x1f   : > { %s613_s4 = scalar_lea.vmem %s146_s25, 128  ;;  %p621_p2 = scmp.lt.s32.totalorder %s146_s25, %s146_s25 }
  0x20   : > { %p614_p1 = scmp.ne.s32.totalorder %s146_s25, %s613_s4  ;;  %p622_p6 = scmp.lt.s32.totalorder %s613_s4, %s613_s4 }
  0x22   : > { %p616_p13 = pnand %p614_p1, %p578_p12  ;;  %p623_p5 = por %p622_p6, %p621_p2 }
  0x24   : > { %p617_p0 = pneg %p616_p13 }
  0x26   : > { %p624_p10 = pnand %p623_p5, %p617_p0 }
  0x28   : > { %627 = shalt.err (!%p624_p10)
}
  0x29   : > { %513 = dma.hbm_to_vmem [thread:$0]  (!%p803_p11), %s925_s2, 128, %s146_s25, [#allocation6]  }
  0x2a   : > { %s826_s7 = sadd.s32 1, %s724_s15   ;;  %s27_s8 = sadd.s32 1, %s720_s14 }
  0x2b   : > { %s24_s9 = ssub.s32 %s724_s15, %s826_s7  ;;  %p34_p1 = scmp.ne.s32.totalorder %s720_s14, %s716_s13 }
  0x2c   : > { %p25_p2 = scmp.eq.s32.totalorder %s24_s9, 0  ;;  %p35_p6 = scmp.eq.s32.totalorder %s724_s15, 0 }
  0x2d   : > { %p935_p12 = scmp.eq.s32.totalorder %s775_s16, 1  ;;  %p524_p7 = scmp.lt.s32.totalorder %s724_s15, 2 }
  0x2e   : > { %s842_s11 = scalar_select %p25_p2, %s720_s14, %s27_s8  }
  0x2f   : > { %p836_p3 = por %p935_p12, %p34_p1  ;;  %p36_p9 = por %p35_p6, %p34_p1 }
  0x30   : > { %s156_s17 = sand.u32 1, %s720_s14   ;;  %s464_s22 = sshll.u32 %s724_s15, 7 }
  0x31   : > { %s936_s10 = scalar_select %p836_p3, 1, 0 }
  0x32   : > { %s463_s21 = sshll.u32 %s156_s17, 3  ;;  %s849_s25 = scalar_lea.hbm %s923_s0, %s464_s22 }
  0x33   : > { %s160_s26 = scalar_lea.vmem [#allocation2], %s463_s21  ;;  %p851_p11 = pnand %p524_p7, %p36_p9 }
  0x34   : > { %s167_s27 = sshll.u32 %s160_s26, 4  ;;  %s157_s29 = scalar_lea.sflag [#allocation3], %s156_s17  ;;  %s168_s27 = int_to_ptr.vmem [resolvable:$true] %s167_s27 }
  0x35   : > { %s628_s30 = scalar_lea.hbm %s849_s25, 128  ;;  %p630_p0 = pneg %p851_p11 }
  0x36   : > { %p629_p13 = scmp.ne.s32.totalorder %s849_s25, %s628_s30  ;;  %s633_s6 = scalar_lea.hbm %s923_s0, 256 }
  0x37   : > { %p634_p1 = scmp.lt.s32.totalorder %s849_s25, %s923_s0  ;;  %p635_p2 = scmp.lt.s32.totalorder %s633_s6, %s628_s30 }
  0x38   : > { %p631_p5 = pnand %p630_p0, %p629_p13 }
  0x39   : > { %p636_p6 = por %p635_p2, %p634_p1 }
  0x3a   : > { %p632_p10 = pneg %p631_p5 }
  0x3c   : > { %p637_p12 = pnand %p636_p6, %p632_p10 }
  0x3e   : > { %640 = shalt.err (!%p637_p12)
}
  0x3f   : > { %s641_s21 = scalar_lea.vmem %s168_s27, 128  ;;  %s730_s17 = smov [#allocation2]  }
  0x40   : > { %p642_p7 = scmp.ne.s32.totalorder %s168_s27, %s641_s21  ;;  %s646_s22 = sshll.u32 %s730_s17, 4  ;;  %s647_s22 = int_to_ptr.vmem [resolvable:$false] %s646_s22 }
  0x41   : > { %s648_s23 = scalar_lea.vmem %s647_s22, 256  ;;  %p649_p13 = scmp.lt.s32.totalorder %s168_s27, %s647_s22 }
  0x42   : > { %p644_p9 = pnand %p642_p7, %p630_p0  ;;  %p650_p5 = scmp.lt.s32.totalorder %s648_s23, %s641_s21 }
  0x44   : > { %p645_p3 = pneg %p644_p9  ;;  %p651_p4 = por %p650_p5, %p649_p13 }
  0x46   : > { %p652_p8 = pnand %p651_p4, %p645_p3 }
  0x48   : > { %655 = shalt.err (!%p652_p8)
}
  0x49   : > { %517 = dma.hbm_to_vmem [thread:$0]  (!%p851_p11), %s849_s25, 128, %s168_s27, %s157_s29  }
  0x4a   : > { %p938_p10 = scmp.ne.s32.totalorder %s933_s20, 0 }
  0x4b   : > { %s872_s24 = sand.u32 (!%p938_p10), 1, %s716_s13   ;;  %p939_p4 = scmp.ne.s32.totalorder (!%p938_p10), %s931_s18, 0 }
  0x4c   : > { %176 = sbr.rel (%p938_p10) target bundleno = 527 (0x20f), region = 32  ;;  %s466_s26 = sshll.u32 (!%p938_p10), %s872_s24, 3 }
  0x4d   : > { %s179_s30 = scalar_lea.sflag (!%p938_p10), [#allocation3], %s872_s24  ;;  %s182_s4 = scalar_lea.vmem (!%p938_p10), [#allocation2], %s466_s26 }
  0x51   : > { %699 = dma.done.wait (%p939_p4), %s179_s30, 128  }
  0x52   : > { %701 = vsyncadd (%p939_p4), %s179_s30, 4294967168  ;;  %p940_p8 = scmp.eq.s32.totalorder %s775_s16, 0 }
  0x54   : > { %703 = dma.done.wait (%p940_p8), [#allocation6], 640   ;;  %p941_p3 = pmov %p940_p8 }
  0x55   : > { %v731_v0 = vmov 0.0   ;;  %vm732_vm0 = vmmov 0   ;;  %v226_v1 = vld [vmem:[#allocation5 + $0x18] sm:$0xff]  ;;  %v225_v2 = vld [vmem:[#allocation5 + $0x10] sm:$0xff]  ;;  %v224_v4 = vld [vmem:[#allocation5 + $0x8] sm:$0xff]  ;;  %vm219_vm1 = vcmask 261120  }
  0x56   : > { %705 = vsyncadd (%p941_p3), [#allocation6], 4294966656  ;;  %484 = vmatprep.subr.mxu0 %v731_v0  ;;  %492 = vmatprep.mubr.msk.f32.mxu0 %vm732_vm0, %v731_v0  ;;  %v217_v3 = vld [vmem:[%s182_s4] sm:$0xff]  ;;  %v223_v6 = vld [vmem:[#allocation5] sm:$0xff]  ;;  %s476_s18 = sshll.u32 %s775_s16, 7  ;;  %s212_s20 = scalar_lea.vmem [#allocation8], %s466_s26 }
  0x57   : > { %485 = vmatpush3.msra.mxu0 %v226_v1  ;;  %v218_v5 = vmul.f32 %v217_v3, %v217_v3  ;;  %v471_v9 = vld [vmem:[#allocation7] ss:$0 sm:$0xff]  ;;  %v472_v19 = vld [vmem:[#allocation7 + $0x2] ss:$0 sm:$0xff]  ;;  %v473_v24 = vld [vmem:[#allocation7 + $0x1] ss:$0 sm:$0xff]  ;;  %s367_s29 = scalar_lea.hbm %s926_s3, %s476_s18 }
  0x58   : > { %486 = vmatprep.subr.mxu0 %v731_v0  ;;  %v474_v44 = vld [vmem:[#allocation7 + $0x3] ss:$0 sm:$0xff]  ;;  %s369_s25 = sshll.u32 %s212_s20, 4  ;;  %s356_s5 = scalar_lea.sflag [#allocation4], %s872_s24  ;;  %s370_s25 = int_to_ptr.vmem [resolvable:$true] %s369_s25 }
  0x59   : > { %487 = vmatpush3.msra.mxu0 %v225_v2  ;;  %v220_v7 = vsel %vm219_vm1, %v218_v5, 0.0  ;;  %s656_s6 = scalar_lea.vmem %s370_s25, 128  ;;  %p942_p0 = scmp.ne.s32.totalorder %s936_s10, 0 }
  0x5a   : > { %488 = vmatprep.subr.mxu0 %v731_v0  ;;  %221 = vadd.xlane.f32.xlu0 %v220_v7  ;;  %p657_p11 = scmp.ne.s32.totalorder %s370_s25, %s656_s6  ;;  %s733_s8 = smov [#allocation8]  }
  0x5b   : > { %489 = vmatpush3.msra.mxu0 %v224_v4  ;;  %s660_s9 = sshll.u32 %s733_s8, 4  ;;  %s661_s9 = int_to_ptr.vmem [resolvable:$false] %s660_s9 }
  0x5c   : > { %490 = vmatprep.subr.mxu0 %v731_v0  ;;  %p658_p1 = pnand %p657_p11, %p942_p0  ;;  %s662_s16 = scalar_lea.vmem %s661_s9, 256 }
  0x5d   : > { %491 = vmatpush3.msra.mxu0 %v223_v6  ;;  %p663_p6 = scmp.lt.s32.totalorder %s370_s25, %s661_s9  ;;  %p664_p12 = scmp.lt.s32.totalorder %s662_s16, %s656_s6 }
  0x5e   : > { %493 = vmatmul.mubr.msk.f32.vlgmr.msra.gmra.mxu0 %vm219_vm1, %v217_v3  ;;  %p659_p2 = pneg %p658_p1 }
  0x5f   : > { %p665_p7 = por %p664_p12, %p663_p6 }
  0x61   : > { %p666_p9 = pnand %p665_p7, %p659_p2 }
  0xe3   : > { %v222_v8 = vpop.xlane.xlu0 %221 }
  0xe4   : > { %v304_v10 = vadd.f32 %v471_v9, %v222_v8 }
 0x11e   : > { %v296_v11 = vpop.f32.mrf.mxu0 }
 0x11f   : > { %v305_v12 = vmul.f32 2.0, %v296_v11 }
 0x120   : > { %v494_v13 = vpop.f32.mrf.mxu0 }
 0x121   : > { %v306_v14 = vsub.f32 %v304_v10, %v305_v12 }
 0x123   : > { %v307_v15 = vmax.f32 %v306_v14, 0.0 }
 0x125   : > { %566 = vrsqrt.f32 %v307_v15  ;;  %vm310_vm2 = vcmp.eq.f32.partialorder %v307_v15, inf  ;;  %v313_v18 = vand.u32 2147483648, %v307_v15  ;;  %vm312_vm3 = vcmp.eq.f32.partialorder %v307_v15, 0.0 }
 0x132   : > { %v567_v16 = vpop.eup %566 }
 0x133   : > { %v309_v17 = vmul.f32 %v567_v16, %v307_v15 }
 0x135   : > { %v311_v20 = vsel %vm310_vm2, %v307_v15, %v309_v17 }
 0x136   : > { %v314_v21 = vsel %vm312_vm3, %v313_v18, %v311_v20 }
 0x137   : > { %v319_v22 = vmul.f32 %v472_v19, %v314_v21  ;;  %v341_v29 = vsub.f32 0.0, %v314_v21 }
 0x139   : > { %568 = vlog2.f32 %v319_v22  ;;  %v342_v32 = vmul.f32 1.442695, %v341_v29 }
 0x146   : > { %v569_v23 = vpop.eup %568 }
 0x147   : > { %v321_v25 = vmul.f32 0.6931472, %v569_v23 }
 0x149   : > { %v326_v26 = vmul.f32 %v473_v24, %v321_v25 }
 0x14b   : > { %v327_v27 = vmul.f32 1.442695, %v326_v26 }
 0x14d   : > { %570 = vpow2.f32 %v327_v27 }
 0x15a   : > { %v571_v28 = vpop.eup %570 }
 0x15b   : > { %v336_v30 = vsub.f32 0.0, %v571_v28  ;;  %v330_v33 = vmul.f32 0.5, %v571_v28  ;;  %v332_v34 = vmul.f32 %v571_v28, %v571_v28  ;;  %vm329_vm4 = vcmp.lt.f32.partialorder %v571_v28, 0.04 }
 0x15d   : > { %v337_v31 = vmul.f32 1.442695, %v336_v30  ;;  %v331_v35 = vsub.f32 1.0, %v330_v33  ;;  %v333_v36 = vmul.f32 0.16666667, %v332_v34 }
 0x15f   : > { %572 = vpow2.f32 %v337_v31  ;;  %v334_v37 = vadd.f32 %v333_v36, %v331_v35 }
 0x160   : > { %574 = vpow2.f32 %v342_v32 }
 0x161   : > { %v335_v39 = vmul.f32 %v571_v28, %v334_v37 }
 0x16c   : > { %v573_v38 = vpop.eup %572 }
 0x16d   : > { %v339_v40 = vsub.f32 1.0, %v573_v38  ;;  %v575_v41 = vpop.eup %574 }
 0x16f   : > { %v340_v42 = vsel %vm329_vm4, %v335_v39, %v339_v40 }
 0x170   : > { %v344_v43 = vmul.f32 %v575_v41, %v340_v42 }
 0x172   : > { %345 = vadd.xlane.f32.xlu0 %v344_v43 }
 0x1fb   : > { %v346_v45 = vpop.xlane.xlu0 %345 }
 0x1fc   : > { %v347_v46 = vsub.f32 1.0, %v346_v45 }
 0x1fe   : > { %v352_v47 = vmul.f32 %v474_v44, %v347_v46 }
 0x200   : > { %v353_v48 = vadd.f32 %v352_v47, %v344_v43 }
 0x202   : > { %354 = vst [vmem:[%s212_s20] sm:$0xff] %v353_v48 }
 0x203   : > { %669 = shalt.err (!%p666_p9)
}
 0x204   : > { %s670_s21 = scalar_lea.hbm %s367_s29, 128  ;;  %s674_s23 = scalar_lea.hbm %s926_s3, 256 }
 0x205   : > { %p671_p13 = scmp.ne.s32.totalorder %s367_s29, %s670_s21  ;;  %p675_p4 = scmp.lt.s32.totalorder %s367_s29, %s926_s3 }
 0x206   : > { %p676_p8 = scmp.lt.s32.totalorder %s674_s23, %s670_s21 }
 0x207   : > { %p672_p5 = pnand %p671_p13, %p942_p0 }
 0x208   : > { %p677_p3 = por %p676_p8, %p675_p4 }
 0x209   : > { %p673_p10 = pneg %p672_p5 }
 0x20b   : > { %p678_p11 = pnand %p677_p3, %p673_p10 }
 0x20d   : > { %681 = shalt.err (!%p678_p11)
}
 0x20e   : > { %505 = dma.vmem_to_hbm [thread:$0]  (%p942_p0), %s370_s25, 128, %s367_s29, %s356_s5  }
 0x20f PF: > { %s381_s30 = sand.u32 1, %s712_s12   ;;  %p943_p1 = scmp.ne.s32.totalorder %s932_s19, 0 }
 0x210   : > { %p944_p2 = scmp.ge.s32.totalorder %s724_s15, 2  ;;  %s382_s4 = scalar_lea.sflag [#allocation4], %s381_s30 }
 0x212   : > { %p519_p6 = pnand %p944_p2, %p943_p1 }
 0x214   : > { %p520_p12 = pneg %p519_p6 }
 0x216   : > { %707 = dma.done.wait (%p520_p12), %s382_s4, 128  }
 0x217   : > { %709 = vsyncadd (%p520_p12), %s382_s4, 4294967168  ;;  %p17_p7 = scmp.ge.s32.totalorder %s826_s7, 4   ;;  %s945_s12 = smov %s716_s13 }
 0x218   : > { %s946_s13 = smov %s720_s14  ;;  %s947_s14 = smov %s842_s11 }
 0x219   : > { %s948_s15 = smov %s826_s7  ;;  %19 = sbr.rel (!%p17_p7) target bundleno = 6 (0x6), region = 85 }
 0x21e   :  { %387 = vsyncpa [#allocation3], 1 }
 0x21f   :  { %389 = vsyncpa [#allocation3 + $0x1], 1 }
 0x220   :  { %390 = vsyncpa [#allocation6], 1 }
 0x221   :  { %391 = vsyncpa [#allocation4], 1 }
 0x222   :  { %393 = vsyncpa [#allocation4 + $0x1], 1 }

</bundles_post_ra>
